<compile_context>
chip_gen: v7x
topology: tpu7x:2x2x1
jax: 0.10.0
libtpu: 0.0.40
codegen_flags: <defaults>
</compile_context>

<pallas_src>
import functools
import math

import jax
import jax.numpy as jnp
from jax.experimental import pallas as pl
from jax.experimental.pallas import tpu as pltpu


def _masked_sum_kernel(x_ref, out_ref, acc_ref, *, n, c, tn, tc, fold):
    # x_ref:   (tn, tc) X tile (any float dtype), VMEM
    # out_ref: (1, 1)   f32 per-row-tile partial sum, SMEM
    # acc_ref: (8, tc) [or (tn, tc) if tn % 8 != 0] f32 VMEM scratch accumulator
    i = pl.program_id(0)   # row-tile axis  ("parallel"  -> megacore shardable)
    j = pl.program_id(1)   # class-tile axis ("arbitrary" -> reduction, innermost)

    @pl.when(j == 0)
    def _init():
        acc_ref[...] = jnp.zeros_like(acc_ref)

    x = x_ref[...].astype(jnp.float32)        # per-tile upcast (bf16-friendly)

    # Mask overhanging rows/cols only when the grid doesn't divide evenly
    # (trace-time check => zero masking cost in the aligned common case).
    masks = []
    if n % tn != 0:
        row = i * tn + jax.lax.broadcasted_iota(jnp.int32, (tn, tc), 0)
        masks.append(row < n)
    if c % tc != 0:
        col = j * tc + jax.lax.broadcasted_iota(jnp.int32, (tn, tc), 1)
        masks.append(col < c)
    if masks:
        valid = masks[0] if len(masks) == 1 else jnp.logical_and(masks[0], masks[1])
        x = jnp.where(valid, x, 0.0)

    # Fold the (tn, tc) tile to a vreg-scale (8, tc) partial along the sublane axis:
    # pure vreg-to-vreg adds on the VPU, no lane relayout, tiny accumulator stores.
    if fold:
        partial = x.reshape(tn // 8, 8, tc).sum(axis=0)
    else:
        partial = x
    acc_ref[...] += partial

    @pl.when(j == pl.num_programs(1) - 1)
    def _finalize():
        # Single cross-lane reduce per row tile, only on the last reduction step.
        out_ref[0, 0] = jnp.sum(acc_ref[...])


def label_smooth_loss(x, target, *, class_num, smooth=0.0,
                      tile_n=512, tile_c=4096):
    n, c = x.shape
    assert c == class_num
    assert class_num > 1, "class_num must be > 1 (smooth/(class_num-1))"
    assert tile_n % 8 == 0 and tile_c % 128 == 0

    # Scalar constants in double precision (Python floats), with t<=0 handling:
    # zero coefficients are dropped at trace time so 0 * (-inf) can never appear.
    off = smooth / (class_num - 1)
    on = 1.0 - smooth
    off_eff = off if off > 0.0 else 0.0
    on_eff = on if on > 0.0 else 0.0
    delta = on_eff - off_eff
    row_const = ((on * math.log(on)) if on > 0.0 else 0.0) + \
                (((class_num - 1) * off * math.log(off)) if off > 0.0 else 0.0)
    inv_nc = 1.0 / (n * c)

    kl_sum = jnp.float32(n * row_const)

    # --- Main N*C memory-bound pass: masked sum(X) via the Pallas kernel -------
    if off_eff != 0.0:
        tn = n if n <= tile_n else tile_n
        tc = c if c <= tile_c else tile_c
        grid = (pl.cdiv(n, tn), pl.cdiv(c, tc))
        fold = (tn % 8 == 0)
        acc_rows = 8 if fold else tn

        kernel = functools.partial(_masked_sum_kernel,
                                   n=n, c=c, tn=tn, tc=tc, fold=fold)

        partials = pl.pallas_call(
            kernel,
            out_shape=jax.ShapeDtypeStruct((grid[0], 1), jnp.float32),
            grid_spec=pltpu.PrefetchScalarGridSpec(
                num_scalar_prefetch=0,
                grid=grid,
                in_specs=[pl.BlockSpec((tn, tc), lambda i, j: (i, j))],
                out_specs=pl.BlockSpec((1, 1), lambda i, j: (i, 0),
                                       memory_space=pltpu.SMEM),
                scratch_shapes=[pltpu.VMEM((acc_rows, tc), jnp.float32)],
            ),
            compiler_params=pltpu.CompilerParams(
                # Row axis parallel (megacore on v7x; neutral on v5e/v6e),
                # reduction axis arbitrary and innermost.
                dimension_semantics=("parallel", "arbitrary"),
                # Default tiles: <= ~16.2 MiB live VMEM (2 x 8 MiB f32 tiles + acc).
                # 48 MiB cap stays safe under v7x's 64 MiB physical VMEM.
                vmem_limit_bytes=48 * 1024 * 1024,
            ),
            cost_estimate=pl.CostEstimate(
                flops=int(2 * n * c),
                transcendentals=0,
                bytes_accessed=int(n * c * x.dtype.itemsize + grid[0] * 4)),
        )(x)
        kl_sum = kl_sum - jnp.float32(off_eff) * jnp.sum(partials)

    # --- Target-column term: gathers only N elements, done in plain JAX --------
    if delta != 0.0:
        tgt_idx = target.astype(jnp.int32).reshape(n, 1)
        gather_sum = jnp.sum(
            jnp.take_along_axis(x, tgt_idx, axis=1).astype(jnp.float32))
        kl_sum = kl_sum - jnp.float32(delta) * gather_sum

    return kl_sum * jnp.float32(inv_nc)


def _reference(x, target, class_num, smooth):
    # Pure-JAX reference with identical semantics (sanity check).
    n, c = x.shape
    true_dist = jnp.full((n, c), smooth / (class_num - 1), dtype=jnp.float32)
    true_dist = true_dist.at[jnp.arange(n), target].set(1.0 - smooth)
    kl = jnp.where(true_dist > 0.0,
                   true_dist * (jnp.log(true_dist) - x.astype(jnp.float32)),
                   0.0)
    return jnp.mean(kl)


if __name__ == "__main__":
    class_num = 16
    smooth = 0.1
    batch = 8

    key = jax.random.PRNGKey(0)
    k_logits, k_tgt = jax.random.split(key)

    logits = jax.random.normal(k_logits, (batch, class_num), dtype=jnp.float32)
    # X is expected to be log-probabilities (KLDivLoss input).
    x = jax.nn.log_softmax(logits, axis=-1)
    target = jax.random.randint(k_tgt, (batch,), 0, class_num, dtype=jnp.int32)

    loss = label_smooth_loss(x, target, class_num=class_num, smooth=smooth)
    loss = jax.block_until_ready(loss)

    ref = jax.block_until_ready(_reference(x, target, class_num, smooth))
    assert jnp.allclose(loss, ref, rtol=1e-5, atol=1e-6), (loss, ref)

    # smooth=0 edge case (target prob exactly 1, off prob 0): degenerates to the
    # gather-only path at trace time but must still match the reference.
    loss0 = jax.block_until_ready(
        label_smooth_loss(x, target, class_num=class_num, smooth=0.0))
    ref0 = jax.block_until_ready(_reference(x, target, class_num, 0.0))
    assert jnp.allclose(loss0, ref0, rtol=1e-5, atol=1e-6), (loss0, ref0)

    print("KERNEL_OK")
</pallas_src>

<mosaic_0001>
module attributes {stable_mosaic.version = 11 : i64} {
  func.func @_masked_sum_kernel(%arg0: i32, %arg1: i32, %arg2: memref<8x16xf32, #tpu.memory_space<vmem>>, %arg3: memref<1x1xf32, #tpu.memory_space<smem>>, %arg4: memref<8x16xf32, #tpu.memory_space<vmem>>) attributes {dimension_semantics = [#tpu.dimension_semantics<parallel>, #tpu.dimension_semantics<arbitrary>], iteration_bounds = array<i64: 1, 1>, scalar_prefetch = 0 : i64, scratch_operands = 1 : i64, tpu.core_type = #tpu.core_type<tc>, window_params = [{transform_indices = @transform_0, window_bounds = array<i64: 8, 16>}, {transform_indices = @transform_1, window_bounds = array<i64: 1, 1>}]} {
    %c0_i32 = arith.constant 0 : i32
    %0 = arith.cmpi eq, %arg1, %c0_i32 : i32
    %1 = arith.extui %0 : i1 to i32
    %c0_i32_0 = arith.constant 0 : i32
    %2 = arith.cmpi ne, %1, %c0_i32_0 : i32
    scf.if %2 {
      %cst_8 = arith.constant 0.000000e+00 : f32
      %12 = vector.broadcast %cst_8 : f32 to vector<8x16xf32>
      %c0_9 = arith.constant 0 : index
      %c0_10 = arith.constant 0 : index
      %13 = vector.load %arg4[%c0_9, %c0_10] : memref<8x16xf32, #tpu.memory_space<vmem>>, vector<8x16xf32>
      tpu.vector_store %arg4[%c0_9, %c0_10], %12 {strides = array<i32>} : memref<8x16xf32, #tpu.memory_space<vmem>>, vector<8x16xf32>,
    } else {
    }
    %c0 = arith.constant 0 : index
    %c0_1 = arith.constant 0 : index
    %3 = vector.load %arg2[%c0, %c0_1] : memref<8x16xf32, #tpu.memory_space<vmem>>, vector<8x16xf32>
    %4 = vector.shape_cast %3 : vector<8x16xf32> to vector<1x8x16xf32>
    %cst = arith.constant dense<0.000000e+00> : vector<8x16xf32>
    %5 = vector.multi_reduction <add>, %4, %cst [0] : vector<1x8x16xf32> to vector<8x16xf32>
    %c0_2 = arith.constant 0 : index
    %c0_3 = arith.constant 0 : index
    %6 = vector.load %arg4[%c0_2, %c0_3] : memref<8x16xf32, #tpu.memory_space<vmem>>, vector<8x16xf32>
    %7 = arith.addf %6, %5 : vector<8x16xf32>
    %c0_4 = arith.constant 0 : index
    %c0_5 = arith.constant 0 : index
    %8 = vector.load %arg4[%c0_4, %c0_5] : memref<8x16xf32, #tpu.memory_space<vmem>>, vector<8x16xf32>
    tpu.vector_store %arg4[%c0_4, %c0_5], %7 {strides = array<i32>} : memref<8x16xf32, #tpu.memory_space<vmem>>, vector<8x16xf32>,
    %c0_i32_6 = arith.constant 0 : i32
    %9 = arith.cmpi eq, %arg1, %c0_i32_6 : i32
    %10 = arith.extui %9 : i1 to i32
    %c0_i32_7 = arith.constant 0 : i32
    %11 = arith.cmpi ne, %10, %c0_i32_7 : i32
    scf.if %11 {
      %c0_8 = arith.constant 0 : index
      %c0_9 = arith.constant 0 : index
      %12 = vector.load %arg4[%c0_8, %c0_9] : memref<8x16xf32, #tpu.memory_space<vmem>>, vector<8x16xf32>
      %13 = vector.shape_cast %12 : vector<8x16xf32> to vector<1x8x16xf32>
      %cst_10 = arith.constant dense<0.000000e+00> : vector<1xf32>
      %14 = vector.multi_reduction <add>, %13, %cst_10 [1, 2] : vector<1x8x16xf32> to vector<1xf32>
      %15 = vector.shape_cast %14 : vector<1xf32> to vector<1x1x1xf32>
      %16 = vector.extract %15[0, 0, 0] : f32 from vector<1x1x1xf32>
      %c0_11 = arith.constant 0 : index
      %c0_12 = arith.constant 0 : index
      %17 = memref.load %arg3[%c0_11, %c0_12] : memref<1x1xf32, #tpu.memory_space<smem>>
      memref.store %16, %arg3[%c0_11, %c0_12] : memref<1x1xf32, #tpu.memory_space<smem>>
    } else {
    }
    return
  }
  func.func @transform_0(%arg0: i32, %arg1: i32) -> (i32, i32) {
    %c0_i32 = arith.constant 0 : i32
    return %arg0, %arg1 : i32, i32
  }
  func.func @transform_1(%arg0: i32, %arg1: i32) -> (i32, i32) {
    %c0_i32 = arith.constant 0 : i32
    %c0_i32_0 = arith.constant 0 : i32
    return %arg0, %c0_i32 : i32, i32
  }
}

</mosaic_0001>

<bundles_post_ra>
// kernel: tpu_custom_call.1
= control target key start
LH: loop header
LB: loop body
LE: loop exit
PB: predicated region body
PF: predicated region fallthrough
CT: control target
= control target key end

     0   :  { %6 = vsyncpa [#allocation4], 0  ;;  %s141_s0 = inlined_call_operand.hbm [shape: f32[8,16], index: 0, kind: input, shape index: {}]   ;;  %s142_s1 = inlined_call_operand.hbm [shape: f32[1,1], index: 1, kind: output, shape index: {}]  }
   0x1   :  { %7 = vsyncpa [#allocation5], 0  ;;  %s104_s6 = smov [#allocation3]   ;;  %s68_s10 = scalar_lea.hbm %s141_s0, 128 }
   0x2   :  { %s14_s7 = sshll.u32 %s104_s6, 4  ;;  %p69_p0 = scmp.ne.s32.totalorder %s141_s0, %s68_s10  ;;  %s15_s7 = int_to_ptr.vmem [resolvable:$true] %s14_s7 }
   0x3   :  { %p72_p1 = scmp.lt.u32.totalorder %s68_s10, %s141_s0 }
   0x5   :  { %p74_p2 = pnand %p72_p1, %p69_p0 }
   0x7   :  { %77 = shalt.err (!%p74_p2)
}
   0x8   :  { %s78_s15 = scalar_lea.vmem %s15_s7, 128  ;;  %p83_p4 = scmp.lt.s32.totalorder %s15_s7, %s15_s7 }
   0x9   :  { %p79_p3 = scmp.ne.s32.totalorder %s15_s7, %s78_s15  ;;  %p84_p5 = scmp.lt.s32.totalorder %s78_s15, %s78_s15 }
   0xb   :  { %p85_p6 = por %p84_p5, %p83_p4 }
   0xd   :  { %p86_p7 = pnand %p85_p6, %p79_p3 }
   0xf   :  { %89 = shalt.err (!%p86_p7)
}
  0x10   :  { %17 = dma.hbm_to_vmem [thread:$0]  %s141_s0, 128, %s15_s7, [#allocation4]  }
  0x11   :  { %100 = dma.done.wait [#allocation4], 128  }
  0x12   :  { %101 = vsyncadd [#allocation4], 4294967168  ;;  %vm25_vm0 = vcmask 130048   ;;  %v105_v0 = vmov 0.0   ;;  %v27_v1 = vld [vmem:[#allocation3] sm:$0xff]  ;;  %s90_s20 = scalar_lea.hbm %s142_s1, 16 }
  0x13   :  { %26 = vst.msk [vmem:[#allocation2] sm:$0xff] %vm25_vm0, %v105_v0  ;;  %p91_p8 = scmp.ne.s32.totalorder %s142_s1, %s90_s20  ;;  %p94_p9 = scmp.lt.u32.totalorder %s90_s20, %s142_s1 }
  0x15   :  { %p96_p10 = pnand %p94_p9, %p91_p8 }
  0x1a   :  { %v29_v2 = vld [vmem:[#allocation2] sm:$0xff] }
  0x1b   :  { %v30_v3 = vadd.f32 %v29_v2, %v27_v1 }
  0x1d   :  { %32 = vst.msk [vmem:[#allocation2] sm:$0xff] %vm25_vm0, %v30_v3 }
  0x24   :  { %v36_v4 = vld [vmem:[#allocation2] sm:$0xff] }
  0x25   :  { %v37_v5 = vsel %vm25_vm0, %v36_v4, 0.0 }
  0x26   :  { %38 = vadd.xlane.f32.xlu0 %v37_v5 }
  0xb3   :  { %v39_v6 = vpop.xlane.xlu0 %38 }
  0xb4   :  { %v40_v7 = vrot.slane %v39_v6, 4 }
  0xb6   :  { %v41_v8 = vadd.f32 %v40_v7, %v39_v6 }
  0xb8   :  { %v42_v9 = vrot.slane %v41_v8, 2 }
  0xba   :  { %v43_v10 = vadd.f32 %v42_v9, %v41_v8 }
  0xbc   :  { %v44_v11 = vrot.slane %v43_v10, 1 }
  0xbe   :  { %v45_v12 = vadd.f32 %v44_v11, %v43_v10 }
  0xc0   :  { %63 = vpush %v45_v12 }
  0xf1   :  { %s64_s0 = spop %63 }
  0xf2   :  { %48 = sst [smem:[#allocation6]] %s64_s0 }
  0xf3   :  { %99 = shalt.err (!%p96_p10)
}
  0xf4   :  { %s106_s25 = smov [#allocation6]  }
  0xf5   :  { %56 = dma.smem_to_hbm %s106_s25, 16, %s142_s1, [#allocation5]  }
  0xf6   :  { %102 = dma.done.wait [#allocation5], 16  }
  0xf7   :  { %103 = vsyncadd [#allocation5], 4294967280 }
  0xf8   :  { %60 = sfence }
  0xf9   :  { %61 = vsyncpa [#allocation4], 1 }
  0xfa   :  { %62 = vsyncpa [#allocation5], 1 }

</bundles_post_ra>
